<compile_context>
chip_gen: v6e
topology: v6e:2x2x1
jax: 0.10.0
libtpu: 0.0.40
codegen_flags: <defaults>
</compile_context>

<pallas_src>
import jax
import jax.numpy as jnp
from jax.experimental import pallas as pl
from jax.experimental.pallas import tpu as pltpu

BN_EPS = 1e-5
LANE = 128


def _round_up(n, m):
    return pl.cdiv(n, m) * m


def _vmem_limit(need_bytes):
    # Generous headroom, but stay under v7x's 64 MiB physical VMEM.
    return int(min(max(2 * need_bytes + (4 << 20), 8 << 20), 64 << 20))


# --------- Pass 1: Linear1 + per-feature sum / sum-of-squares accumulation ----------
def _make_stats_kernel(batch, tile_b):
    ragged = (batch % tile_b) != 0

    def stats_kernel(x_ref, w1_ref, stats_ref):
        j = pl.program_id(0)

        @pl.when(j == 0)
        def _():
            stats_ref[...] = jnp.zeros_like(stats_ref)

        x = x_ref[...]                                   # [tile_b, E] f32
        if ragged:
            # Zero out rows of the (padded) last tile so they don't pollute stats.
            row = jax.lax.broadcasted_iota(jnp.int32, x.shape, 0) + j * tile_b
            x = jnp.where(row < batch, x, 0.0)
        # Plain A @ B (weights prepped K-major): bf16 MXU, f32 accumulate.
        h = jnp.dot(x.astype(jnp.bfloat16), w1_ref[...],
                    preferred_element_type=jnp.float32)  # [tile_b, Hp]
        stats_ref[...] += jnp.concatenate(
            [jnp.sum(h, axis=0, keepdims=True),
             jnp.sum(h * h, axis=0, keepdims=True)], axis=0)  # [2, Hp]

    return stats_kernel


# --------- Pass 2: folded BN scale/shift + ReLU + Linear2 (bias-free) ----------
def _make_apply_kernel(batch):
    inv_b = 1.0 / float(batch)

    def apply_kernel(x_ref, w1_ref, stats_ref, gamma_ref, beta_ref, w2_ref, o_ref):
        # Recompute Linear1 (cheap for small E; avoids an HBM round trip of h).
        h = jnp.dot(x_ref[...].astype(jnp.bfloat16), w1_ref[...],
                    preferred_element_type=jnp.float32)            # [tile_b, Hp]
        stats = stats_ref[...]                                      # [2, Hp]
        mean = stats[0:1, :] * inv_b
        var = stats[1:2, :] * inv_b - mean * mean                   # biased var (train-mode BN)
        scale = gamma_ref[...] * jax.lax.rsqrt(var + BN_EPS)        # [1, Hp]
        shift = beta_ref[...] - mean * scale                        # [1, Hp]
        # Fused scale/shift + ReLU, emitted directly as the bf16 Linear2 LHS.
        hr = jnp.maximum(h * scale + shift, 0.0).astype(jnp.bfloat16)
        o_ref[...] = jnp.dot(hr, w2_ref[...], preferred_element_type=jnp.float32)

    return apply_kernel


def prepare_projector_params(params):
    """One-time param prep: K-major transpose + bf16 cast + lane padding.

    Padded hidden lanes: w1's pad columns are zero -> h == 0 -> var == 0; gamma and
    beta are padded with ZEROS so scale == shift == 0 there (hr == 0 exactly), and
    w2's pad rows are zero too, so padding can never leak into the real outputs.
    Keep the zero padding of gamma/beta if this code is ever modified.
    """
    w1 = params["w1"]          # [H, E]  (torch nn.Linear layout)
    gamma = params["gamma"]    # [H]
    beta = params["beta"]      # [H]
    w2 = params["w2"]          # [O, H]
    H, E = w1.shape
    O = w2.shape[0]
    Hp = _round_up(H, LANE)
    Op = _round_up(O, LANE)

    w1t = jnp.zeros((E, Hp), jnp.bfloat16).at[:, :H].set(w1.T.astype(jnp.bfloat16))
    w2t = jnp.zeros((Hp, Op), jnp.bfloat16).at[:H, :O].set(w2.T.astype(jnp.bfloat16))
    gammap = jnp.zeros((1, Hp), jnp.float32).at[0, :H].set(gamma.astype(jnp.float32))
    betap = jnp.zeros((1, Hp), jnp.float32).at[0, :H].set(beta.astype(jnp.float32))
    return {"w1": w1t, "gamma": gammap, "beta": betap, "w2": w2t,
            "hidden_dim": H, "out_dim": O}


def projector_forward(x, prep, *, max_tile_b=512):
    """x: [B, E] float32. Returns the lane-padded output [B, Op] (f32).

    Consumers should slice [:, :prep['out_dim']] lazily / fold the slice into the
    next op rather than forcing a separate post-kernel copy pass.
    """
    B, E = x.shape
    Hp = prep["w1"].shape[1]
    Op = prep["w2"].shape[1]

    tb = B if B <= max_tile_b else max_tile_b          # max_tile_b is a multiple of 8
    nb = pl.cdiv(B, tb)

    w1, w2 = prep["w1"], prep["w2"]
    gamma, beta = prep["gamma"], prep["beta"]

    x_spec = pl.BlockSpec((tb, E), lambda j: (j, 0))
    w1_spec = pl.BlockSpec((E, Hp), lambda j: (0, 0))      # VMEM-resident across tiles
    w2_spec = pl.BlockSpec((Hp, Op), lambda j: (0, 0))
    vec_spec = pl.BlockSpec((1, Hp), lambda j: (0, 0))
    stats_spec = pl.BlockSpec((2, Hp), lambda j: (0, 0))

    # ---- Pass 1: global per-feature sum / sumsq over the whole batch ----
    need1 = 2 * tb * E * 4 + E * Hp * 2 + 2 * Hp * 4 + tb * Hp * 4
    stats = pl.pallas_call(
        _make_stats_kernel(B, tb),
        out_shape=jax.ShapeDtypeStruct((2, Hp), jnp.float32),
        grid=(nb,),
        in_specs=[x_spec, w1_spec],
        out_specs=stats_spec,
        compiler_params=pltpu.CompilerParams(
            dimension_semantics=("arbitrary",),            # cross-tile reduction
            vmem_limit_bytes=_vmem_limit(need1)),
        cost_estimate=pl.CostEstimate(
            flops=2 * B * E * Hp, transcendentals=0,
            bytes_accessed=B * E * 4 + E * Hp * 2 + 2 * Hp * 4),
    )(x, w1)

    # ---- Pass 2: normalize + ReLU + Linear2 (batch tiles independent) ----
    need2 = (2 * tb * E * 4 + E * Hp * 2 + Hp * Op * 2 + 4 * Hp * 4
             + 2 * tb * Op * 4 + tb * Hp * 6)
    out_padded = pl.pallas_call(
        _make_apply_kernel(B),
        out_shape=jax.ShapeDtypeStruct((B, Op), jnp.float32),
        grid=(nb,),
        in_specs=[x_spec, w1_spec, stats_spec, vec_spec, vec_spec, w2_spec],
        out_specs=pl.BlockSpec((tb, Op), lambda j: (j, 0)),
        compiler_params=pltpu.CompilerParams(
            dimension_semantics=("parallel",),             # v7x: shard tiles over TCs
            vmem_limit_bytes=_vmem_limit(need2)),
        cost_estimate=pl.CostEstimate(
            flops=2 * B * E * Hp + 2 * B * Hp * Op, transcendentals=Hp * nb,
            bytes_accessed=(B * E * 4 + E * Hp * 2 + Hp * Op * 2
                            + 2 * Hp * 4 + 2 * Hp * 4 + B * Op * 4)),
    )(x, w1, stats, gamma, beta, w2)
    return out_padded


def init_projector_params(key, embedding, hidden, out_dim):
    """Deterministic synthetic init matching the torch param shapes."""
    k1, k2, k3 = jax.random.split(key, 3)
    w1 = jax.random.normal(k1, (hidden, embedding), jnp.float32) * 0.05
    b1 = jax.random.normal(k2, (hidden,), jnp.float32) * 0.05  # cancelled by train-mode BN
    gamma = jnp.ones((hidden,), jnp.float32)
    beta = jnp.zeros((hidden,), jnp.float32)
    w2 = jax.random.normal(k3, (out_dim, hidden), jnp.float32) * 0.05
    return {"w1": w1, "b1": b1, "gamma": gamma, "beta": beta, "w2": w2}


def reference_forward(x, params):
    """Pure-JAX f32 reference mirroring the PyTorch module (training-mode BN)."""
    h = x @ params["w1"].T + params["b1"]
    mean = jnp.mean(h, axis=0, keepdims=True)
    var = jnp.mean((h - mean) ** 2, axis=0, keepdims=True)
    hn = (h - mean) * jax.lax.rsqrt(var + BN_EPS) * params["gamma"] + params["beta"]
    hr = jnp.maximum(hn, 0.0)
    return hr @ params["w2"].T


if __name__ == "__main__":
    # Projector(arch="64-48", embedding=32) -> layer dims [32, 64, 48]
    B, E, H, O = 8, 32, 64, 48
    key = jax.random.PRNGKey(0)
    kx, kp = jax.random.split(key)
    x = jax.random.normal(kx, (B, E), jnp.float32)
    params = init_projector_params(kp, E, H, O)
    prep = prepare_projector_params(params)

    out_padded = jax.block_until_ready(projector_forward(x, prep))
    assert out_padded.shape == (B, _round_up(O, LANE)), out_padded.shape

    # Test-harness slice only; real consumers fold this into the next op.
    out = out_padded[:, :prep["out_dim"]]
    ref = reference_forward(x, params)
    max_err = float(jnp.max(jnp.abs(out - ref)))
    assert jnp.allclose(out, ref, atol=5e-2, rtol=5e-2), max_err
    # Padded output lanes must be exactly zero (zero-padded gamma/beta and w2).
    assert bool(jnp.all(out_padded[:, prep["out_dim"]:] == 0.0))
    print("KERNEL_OK")
</pallas_src>

<mosaic_0001>
module attributes {stable_mosaic.version = 11 : i64} {
  func.func @stats_kernel(%arg0: i32, %arg1: memref<8x32xf32, #tpu.memory_space<vmem>>, %arg2: memref<32x128xbf16, #tpu.memory_space<vmem>>, %arg3: memref<2x128xf32, #tpu.memory_space<vmem>>) attributes {dimension_semantics = [#tpu.dimension_semantics<arbitrary>], iteration_bounds = array<i64: 1>, scalar_prefetch = 0 : i64, scratch_operands = 0 : i64, tpu.core_type = #tpu.core_type<tc>, window_params = [{transform_indices = @transform_0, window_bounds = array<i64: 8, 32>}, {pipeline_mode = #tpu.pipeline_mode<synchronous>, transform_indices = @transform_1, window_bounds = array<i64: 32, 128>}, {pipeline_mode = #tpu.pipeline_mode<synchronous>, transform_indices = @transform_2, window_bounds = array<i64: 2, 128>}]} {
    %c0_i32 = arith.constant 0 : i32
    %0 = arith.cmpi eq, %arg0, %c0_i32 : i32
    %1 = arith.extui %0 : i1 to i32
    %c0_i32_0 = arith.constant 0 : i32
    %2 = arith.cmpi ne, %1, %c0_i32_0 : i32
    scf.if %2 {
      %cst_10 = arith.constant 0.000000e+00 : f32
      %16 = vector.broadcast %cst_10 : f32 to vector<2x128xf32>
      %c0_11 = arith.constant 0 : index
      %c0_12 = arith.constant 0 : index
      %17 = vector.load %arg3[%c0_11, %c0_12] : memref<2x128xf32, #tpu.memory_space<vmem>>, vector<2x128xf32>
      tpu.vector_store %arg3[%c0_11, %c0_12], %16 {strides = array<i32>} : memref<2x128xf32, #tpu.memory_space<vmem>>, vector<2x128xf32>,
    } else {
    }
    %c0 = arith.constant 0 : index
    %c0_1 = arith.constant 0 : index
    %3 = vector.load %arg1[%c0, %c0_1] : memref<8x32xf32, #tpu.memory_space<vmem>>, vector<8x32xf32>
    %4 = arith.truncf %3 : vector<8x32xf32> to vector<8x32xbf16>
    %c0_2 = arith.constant 0 : index
    %c0_3 = arith.constant 0 : index
    %5 = vector.load %arg2[%c0_2, %c0_3] : memref<32x128xbf16, #tpu.memory_space<vmem>>, vector<32x128xbf16>
    %cst = arith.constant dense<0.000000e+00> : vector<8x128xf32>
    %6 = tpu.matmul %4, %5, %cst {dimension_numbers = #tpu.dot_dimension_numbers<[1], [0], [0], [1], [0, 0, 1, 1], [], []>} : vector<8x32xbf16>, vector<32x128xbf16>, vector<8x128xf32> -> vector<8x128xf32>
    %c0_4 = arith.constant 0 : index
    %c0_5 = arith.constant 0 : index
    %7 = vector.load %arg3[%c0_4, %c0_5] : memref<2x128xf32, #tpu.memory_space<vmem>>, vector<2x128xf32>
    %cst_6 = arith.constant dense<0.000000e+00> : vector<128xf32>
    %8 = vector.multi_reduction <add>, %6, %cst_6 [0] : vector<8x128xf32> to vector<128xf32>
    %9 = vector.shape_cast %8 : vector<128xf32> to vector<1x128xf32>
    %10 = arith.mulf %6, %6 : vector<8x128xf32>
    %cst_7 = arith.constant dense<0.000000e+00> : vector<128xf32>
    %11 = vector.multi_reduction <add>, %10, %cst_7 [0] : vector<8x128xf32> to vector<128xf32>
    %12 = vector.shape_cast %11 : vector<128xf32> to vector<1x128xf32>
    %13 = tpu.concatenate %9, %12 in 0 : vector<1x128xf32>, vector<1x128xf32> -> vector<2x128xf32>
    %14 = arith.addf %7, %13 : vector<2x128xf32>
    %c0_8 = arith.constant 0 : index
    %c0_9 = arith.constant 0 : index
    %15 = vector.load %arg3[%c0_8, %c0_9] : memref<2x128xf32, #tpu.memory_space<vmem>>, vector<2x128xf32>
    tpu.vector_store %arg3[%c0_8, %c0_9], %14 {strides = array<i32>} : memref<2x128xf32, #tpu.memory_space<vmem>>, vector<2x128xf32>,
    return
  }
  func.func @transform_0(%arg0: i32) -> (i32, i32) {
    %c0_i32 = arith.constant 0 : i32
    %c0_i32_0 = arith.constant 0 : i32
    return %arg0, %c0_i32 : i32, i32
  }
  func.func @transform_1(%arg0: i32) -> (i32, i32) {
    %c0_i32 = arith.constant 0 : i32
    %c0_i32_0 = arith.constant 0 : i32
    %c0_i32_1 = arith.constant 0 : i32
    return %c0_i32, %c0_i32_0 : i32, i32
  }
  func.func @transform_2(%arg0: i32) -> (i32, i32) {
    %c0_i32 = arith.constant 0 : i32
    %c0_i32_0 = arith.constant 0 : i32
    %c0_i32_1 = arith.constant 0 : i32
    return %c0_i32, %c0_i32_0 : i32, i32
  }
}

</mosaic_0001>

<bundles_post_ra>
// kernel: tpu_custom_call.1
= control target key start
LH: loop header
LB: loop body
LE: loop exit
PB: predicated region body
PF: predicated region fallthrough
CT: control target
= control target key end

     0   :  { %7 = vsyncpa [#allocation3], 0  ;;  %s260_s0 = inlined_call_operand.hbm [shape: f32[8,32], index: 0, kind: input, shape index: {}]   ;;  %s261_s1 = inlined_call_operand.hbm [shape: bf16[32,128], index: 1, kind: input, shape index: {}]   ;;  %s262_s2 = inlined_call_operand.hbm [shape: f32[2,128], index: 2, kind: output, shape index: {}]  }
   0x1   :  { %8 = vsyncpa [#allocation6], 0 }
   0x2   :  { %9 = vsyncpa [#allocation4], 0  ;;  %s229_s9 = smov [#allocation2]   ;;  %s230_s11 = smov [#allocation5]  }
   0x3   :  { %s16_s10 = sshll.u32 %s229_s9, 4  ;;  %s25_s12 = sshll.u32 %s230_s11, 4  ;;  %s17_s10 = int_to_ptr.vmem [resolvable:$true] %s16_s10  ;;  %s26_s12 = int_to_ptr.vmem [resolvable:$true] %s25_s12 }
   0x4   :  { %s171_s13 = scalar_lea.vmem %s17_s10, 128  ;;  %p176_p1 = scmp.lt.s32.totalorder %s17_s10, %s17_s10 }
   0x5   :  { %p172_p0 = scmp.ne.s32.totalorder %s17_s10, %s171_s13  ;;  %p177_p2 = scmp.lt.s32.totalorder %s171_s13, %s171_s13 }
   0x7   :  { %p178_p3 = por %p177_p2, %p176_p1 }
   0x9   :  { %p179_p4 = pnand %p178_p3, %p172_p0 }
   0xb   :  { %182 = shalt.err (!%p179_p4)
}
   0xc   :  { %19 = dma.hbm_to_vmem [thread:$0]  %s260_s0, 128, %s17_s10, [#allocation3]  }
   0xd   :  { %s191_s16 = scalar_lea.vmem %s26_s12, 256  ;;  %p196_p6 = scmp.lt.s32.totalorder %s26_s12, %s26_s12 }
   0xe   :  { %p192_p5 = scmp.ne.s32.totalorder %s26_s12, %s191_s16  ;;  %p197_p7 = scmp.lt.s32.totalorder %s191_s16, %s191_s16 }
  0x10   :  { %p198_p8 = por %p197_p7, %p196_p6 }
  0x12   :  { %p199_p9 = pnand %p198_p8, %p192_p5 }
  0x14   :  { %202 = shalt.err (!%p199_p9)
}
  0x15   :  { %s231_s17 = smov 64   ;;  %s232_s18 = smov 4  }
  0x16   :  { %31 = dma.hbm_to_vmem [thread:$0]  %s261_s1, 256, %s26_s12, [#allocation6], %s231_s17, %s231_s17, %s232_s18  }
  0x17   :  { %223 = dma.done.wait [#allocation3], 128  }
  0x18   :  { %224 = vsyncadd [#allocation3], 4294967168 }
  0x19   :  { %225 = dma.done.wait [#allocation6], 256  }
  0x1a   :  { %226 = vsyncadd [#allocation6], 4294967040  ;;  %v233_v0 = vmov 0.0   ;;  %vm234_vm0 = vmmov 0   ;;  %v161_v1 = vld [vmem:[#allocation5 + $0x8] sm:$0xff]   ;;  %v162_v2 = vld [vmem:[#allocation5] sm:$0xff]  }
  0x1b   :  { %146 = vmatprep.subr.bf16.mxu0 %v233_v0  ;;  %43 = vst [vmem:[#allocation7] sm:$0x3] %v233_v0  ;;  %150 = vmatprep.mubr.msk.bf16.mxu0 %vm234_vm0, %v233_v0  ;;  %v44_v3 = vld [vmem:[#allocation2] sm:$0xff]  ;;  %vm62_vm1 = vcmask 261120   ;;  %vm120_vm2 = vcmask 1040384   ;;  %s235_s0 = smov [#allocation7]  }
  0x1c   :  { %147 = vmatpush3.bf16.msra.mxu0 %v161_v1  ;;  %v45_v4 = vpack.c.bf16 %v44_v3, %v44_v3  ;;  %s130_s1 = sshll.u32 %s235_s0, 4  ;;  %s131_s1 = int_to_ptr.vmem [resolvable:$true] %s130_s1 }
  0x1d   :  { %148 = vmatprep.subr.bf16.mxu0 %v233_v0  ;;  %s203_s21 = scalar_lea.vmem %s131_s1, 32  ;;  %p208_p11 = scmp.lt.s32.totalorder %s131_s1, %s131_s1 }
  0x1e   :  { %p204_p10 = scmp.ne.s32.totalorder %s131_s1, %s203_s21  ;;  %p209_p12 = scmp.lt.s32.totalorder %s203_s21, %s203_s21 }
  0x20   :  { %149 = vmatpush3.bf16.msra.mxu0 %v162_v2  ;;  %p210_p13 = por %p209_p12, %p208_p11 }
  0x22   :  { %v106_v22 = vld [vmem:[#allocation7] sm:$0x3]  ;;  %p211_p0 = pnand %p210_p13, %p204_p10 }
  0x23   :  { %151 = vmatmul.mubr.msk.bf16.vlgmr.msra.gmra.mxu0 %vm62_vm1, %v45_v4 }
  0xe3   :  { %v100_v5 = vpop.f32.mrf.mxu0 }
  0xe4   :  { %v107_v6 = vrot.slane %v100_v5, 4  ;;  %v113_v7 = vmul.f32 %v100_v5, %v100_v5 }
  0xe5   :  { %v152_v8 = vpop.f32.mrf.mxu0 }
  0xe6   :  { %v108_v9 = vadd.f32 %v107_v6, %v100_v5  ;;  %v114_v10 = vrot.slane %v113_v7, 4 }
  0xe7   :  { %v103_v11 = vpop.f32.mrf.mxu0 }
  0xe8   :  { %v109_v12 = vrot.slane %v108_v9, 2  ;;  %v115_v13 = vadd.f32 %v114_v10, %v113_v7 }
  0xe9   :  { %v153_v14 = vpop.f32.mrf.mxu0 }
  0xea   :  { %v110_v15 = vadd.f32 %v109_v12, %v108_v9  ;;  %v116_v16 = vrot.slane %v115_v13, 2 }
  0xec   :  { %v111_v17 = vrot.slane %v110_v15, 1  ;;  %v117_v18 = vadd.f32 %v116_v16, %v115_v13 }
  0xee   :  { %v118_v19 = vrot.slane %v117_v18, 1  ;;  %v112_v20 = vadd.f32 %v111_v17, %v110_v15 }
  0xf0   :  { %v119_v21 = vadd.f32 %v118_v19, %v117_v18 }
  0xf2   :  { %v121_v23 = vsel %vm120_vm2, %v112_v20, %v119_v21 }
  0xf3   :  { %v122_v24 = vadd.f32 %v121_v23, %v106_v22 }
  0xf5   :  { %123 = vst [vmem:[#allocation7] sm:$0x3] %v122_v24 }
  0xf6   :  { %214 = shalt.err (!%p211_p0)
}
  0xf7   :  { %133 = dma.vmem_to_hbm [thread:$0]  %s131_s1, 32, %s262_s2, [#allocation4]  }
  0xf8   :  { %227 = dma.done.wait [#allocation4], 32  }
  0xf9   :  { %228 = vsyncadd [#allocation4], 4294967264 }
  0xfa   :  { %137 = vsyncpa [#allocation3], 1 }
  0xfb   :  { %138 = vsyncpa [#allocation6], 1 }
  0xfc   :  { %139 = vsyncpa [#allocation4], 1 }

</bundles_post_ra>
